<compile_context>
chip_gen: v5e
topology: v5e:2x2
jax: 0.10.0
libtpu: 0.0.40
codegen_flags: <defaults>
</compile_context>

<pallas_src>
import functools

import jax
import jax.numpy as jnp
from jax.experimental import pallas as pl
from jax.experimental.pallas import tpu as pltpu

_LANE = 128
_SUBLANE = 8
_MAX_BLOCK_ROWS = 2048  # (1, 2048, 128) f32 block = 1 MiB; int8 block = 256 KiB


def _round_up(x, m):
    return -(-x // m) * m


def _soft_dice_kernel(m1_ref, m2_ref, out_ref, inter_acc, m1_acc, *, m2_sum, smooth):
    # m1_ref:   (1, R, 128) f32   raw-logits tile (channel-major flatten)
    # m2_ref:   (1, R, 128) int8  one-hot target tile (one-hot-last flatten)
    # out_ref:  (1, 8, 128) f32   per-sample score (broadcast over the block)
    # inter_acc, m1_acc: (8, 128) f32 VMEM accumulators, persistent across k
    k = pl.program_id(1)

    @pl.when(k == 0)
    def _init():
        inter_acc[...] = jnp.zeros_like(inter_acc)
        m1_acc[...] = jnp.zeros_like(m1_acc)

    probs = jax.nn.sigmoid(m1_ref[0])          # (R, 128), EUP
    tgt = m2_ref[0].astype(jnp.float32)        # (R, 128), VPU convert

    rows = probs.shape[0]
    # Fold sublane groups with elementwise (VPU) adds only; keep the XLU out
    # of the inner loop.
    m1_part = jnp.sum(probs.reshape(rows // _SUBLANE, _SUBLANE, _LANE), axis=0)
    inter_part = jnp.sum((probs * tgt).reshape(rows // _SUBLANE, _SUBLANE, _LANE), axis=0)
    m1_acc[...] += m1_part
    inter_acc[...] += inter_part

    @pl.when(k == pl.num_programs(1) - 1)
    def _finalize():
        inter_tot = jnp.sum(inter_acc[...])    # single cross-lane reduce
        m1_tot = jnp.sum(m1_acc[...])
        score = (2.0 * inter_tot + smooth) / (m1_tot + m2_sum + smooth)
        out_ref[...] = jnp.full(out_ref.shape, score, dtype=out_ref.dtype)


def soft_dice_loss(logits, targets):
    """logits: (N, 3, H, W) float; targets: (N, H, W) int class ids in [0, 3)."""
    n, c, h, w = logits.shape
    assert c == 3, "SoftDiceLoss one-hots targets to 3 classes; logits must have C=3"
    d = c * h * w

    # --- wrapper-side layout glue (mirrors torch .view flatten orders) ---
    m1 = logits.astype(jnp.float32).reshape(n, d)                         # (N, 3*H*W)
    onehot = targets[..., None] == jnp.arange(3, dtype=targets.dtype)     # (N, H, W, 3)
    m2 = onehot.astype(jnp.int8).reshape(n, d)                            # (N, H*W*3) int8

    # --- tiling: lane-dense (N, Dr, 128) slabs, blocks of (1, R, 128) ---
    dr_raw = pl.cdiv(d, _LANE)
    rows_per_block = _round_up(min(_MAX_BLOCK_ROWS, dr_raw), 32)  # mult of 32 (int8 tiling)
    dr = _round_up(dr_raw, rows_per_block)
    k_steps = dr // rows_per_block
    pad = dr * _LANE - d
    if pad:
        # sigmoid(-1e30) == 0 and one-hot pad == 0 -> pads contribute nothing.
        m1 = jnp.pad(m1, ((0, 0), (0, pad)), constant_values=-1e30)
        m2 = jnp.pad(m2, ((0, 0), (0, pad)), constant_values=0)
    m1 = m1.reshape(n, dr, _LANE)
    m2 = m2.reshape(n, dr, _LANE)

    kernel = functools.partial(_soft_dice_kernel, m2_sum=float(h * w), smooth=1.0)

    bytes_accessed = n * dr * _LANE * (4 + 1) + n * _SUBLANE * _LANE * 4
    cost = pl.CostEstimate(flops=5 * n * d, transcendentals=n * d,
                           bytes_accessed=bytes_accessed)

    scores = pl.pallas_call(
        kernel,
        out_shape=jax.ShapeDtypeStruct((n, _SUBLANE, _LANE), jnp.float32),
        grid=(n, k_steps),
        in_specs=[
            pl.BlockSpec((1, rows_per_block, _LANE), lambda i, k: (i, k, 0)),
            pl.BlockSpec((1, rows_per_block, _LANE), lambda i, k: (i, k, 0)),
        ],
        out_specs=pl.BlockSpec((1, _SUBLANE, _LANE), lambda i, k: (i, 0, 0)),
        scratch_shapes=[
            pltpu.VMEM((_SUBLANE, _LANE), jnp.float32),
            pltpu.VMEM((_SUBLANE, _LANE), jnp.float32),
        ],
        compiler_params=pltpu.CompilerParams(
            dimension_semantics=("parallel", "arbitrary"),
            vmem_limit_bytes=32 * 1024 * 1024,
        ),
        cost_estimate=cost,
    )(m1, m2)

    # Tiny final reduce over N kept outside the kernel so the batch axis can be
    # megacore-parallel without any cross-core accumulation.
    per_sample_score = scores[:, 0, 0]
    return 1.0 - jnp.sum(per_sample_score) / n


if __name__ == "__main__":
    key = jax.random.PRNGKey(0)
    k_logits, k_tgt = jax.random.split(key)

    N, C, H, W = 2, 3, 16, 16  # C fixed to 3 by F.one_hot(targets, 3)
    logits = jax.random.normal(k_logits, (N, C, H, W), dtype=jnp.float32)
    targets = jax.random.randint(k_tgt, (N, H, W), 0, 3, dtype=jnp.int32)

    loss = soft_dice_loss(logits, targets)
    jax.block_until_ready(loss)

    # quick sanity check against pure-JAX reference (same math as the module)
    m1_ref = jax.nn.sigmoid(logits).reshape(N, -1)
    m2_ref = jax.nn.one_hot(targets, 3, dtype=jnp.float32).reshape(N, -1)
    score_ref = (2.0 * jnp.sum(m1_ref * m2_ref, 1) + 1.0) / (
        jnp.sum(m1_ref, 1) + jnp.sum(m2_ref, 1) + 1.0
    )
    loss_ref = 1.0 - jnp.sum(score_ref) / N
    assert jnp.allclose(loss, loss_ref, atol=1e-5, rtol=1e-5), (loss, loss_ref)

    print("KERNEL_OK")
</pallas_src>

<mosaic_0001>
module attributes {stable_mosaic.version = 11 : i64} {
  func.func @_soft_dice_kernel(%arg0: i32, %arg1: i32, %arg2: memref<1x32x128xf32, #tpu.memory_space<vmem>>, %arg3: memref<1x32x128xi8, #tpu.memory_space<vmem>>, %arg4: memref<1x8x128xf32, #tpu.memory_space<vmem>>, %arg5: memref<8x128xf32, #tpu.memory_space<vmem>>, %arg6: memref<8x128xf32, #tpu.memory_space<vmem>>) attributes {dimension_semantics = [#tpu.dimension_semantics<parallel>, #tpu.dimension_semantics<arbitrary>], iteration_bounds = array<i64: 2, 1>, scalar_prefetch = 0 : i64, scratch_operands = 2 : i64, tpu.core_type = #tpu.core_type<tc>, window_params = [{transform_indices = @transform_0, window_bounds = array<i64: 1, 32, 128>}, {transform_indices = @transform_1, window_bounds = array<i64: 1, 32, 128>}, {transform_indices = @transform_2, window_bounds = array<i64: 1, 8, 128>}]} {
    %c0_i32 = arith.constant 0 : i32
    %0 = arith.cmpi eq, %arg1, %c0_i32 : i32
    %1 = arith.extui %0 : i1 to i32
    %c0_i32_0 = arith.constant 0 : i32
    %2 = arith.cmpi ne, %1, %c0_i32_0 : i32
    scf.if %2 {
      %cst_18 = arith.constant 0.000000e+00 : f32
      %27 = vector.broadcast %cst_18 : f32 to vector<8x128xf32>
      %c0_19 = arith.constant 0 : index
      %c0_20 = arith.constant 0 : index
      %28 = vector.load %arg5[%c0_19, %c0_20] : memref<8x128xf32, #tpu.memory_space<vmem>>, vector<8x128xf32>
      tpu.vector_store %arg5[%c0_19, %c0_20], %27 {strides = array<i32>} : memref<8x128xf32, #tpu.memory_space<vmem>>, vector<8x128xf32>,
      %cst_21 = arith.constant 0.000000e+00 : f32
      %29 = vector.broadcast %cst_21 : f32 to vector<8x128xf32>
      %c0_22 = arith.constant 0 : index
      %c0_23 = arith.constant 0 : index
      %30 = vector.load %arg6[%c0_22, %c0_23] : memref<8x128xf32, #tpu.memory_space<vmem>>, vector<8x128xf32>
      tpu.vector_store %arg6[%c0_22, %c0_23], %29 {strides = array<i32>} : memref<8x128xf32, #tpu.memory_space<vmem>>, vector<8x128xf32>,
    } else {
    }
    %c0 = arith.constant 0 : index
    %c0_1 = arith.constant 0 : index
    %c0_2 = arith.constant 0 : index
    %3 = vector.load %arg2[%c0, %c0_1, %c0_2] : memref<1x32x128xf32, #tpu.memory_space<vmem>>, vector<1x32x128xf32>
    %4 = vector.shape_cast %3 : vector<1x32x128xf32> to vector<32x128xf32>
    %5 = arith.negf %4 : vector<32x128xf32>
    %6 = math.exp %5 : vector<32x128xf32>
    %cst = arith.constant 1.000000e+00 : f32
    %7 = vector.broadcast %cst : f32 to vector<32x128xf32>
    %8 = arith.addf %7, %6 : vector<32x128xf32>
    %9 = arith.divf %7, %8 : vector<32x128xf32>
    %c0_3 = arith.constant 0 : index
    %c0_4 = arith.constant 0 : index
    %c0_5 = arith.constant 0 : index
    %10 = vector.load %arg3[%c0_3, %c0_4, %c0_5] : memref<1x32x128xi8, #tpu.memory_space<vmem>>, vector<1x32x128xi8>
    %11 = vector.shape_cast %10 : vector<1x32x128xi8> to vector<32x128xi8>
    %12 = arith.sitofp %11 : vector<32x128xi8> to vector<32x128xf32>
    %13 = vector.shape_cast %9 : vector<32x128xf32> to vector<4x8x128xf32>
    %cst_6 = arith.constant dense<0.000000e+00> : vector<8x128xf32>
    %14 = vector.multi_reduction <add>, %13, %cst_6 [0] : vector<4x8x128xf32> to vector<8x128xf32>
    %15 = arith.mulf %9, %12 : vector<32x128xf32>
    %16 = vector.shape_cast %15 : vector<32x128xf32> to vector<4x8x128xf32>
    %cst_7 = arith.constant dense<0.000000e+00> : vector<8x128xf32>
    %17 = vector.multi_reduction <add>, %16, %cst_7 [0] : vector<4x8x128xf32> to vector<8x128xf32>
    %c0_8 = arith.constant 0 : index
    %c0_9 = arith.constant 0 : index
    %18 = vector.load %arg6[%c0_8, %c0_9] : memref<8x128xf32, #tpu.memory_space<vmem>>, vector<8x128xf32>
    %19 = arith.addf %18, %14 : vector<8x128xf32>
    %c0_10 = arith.constant 0 : index
    %c0_11 = arith.constant 0 : index
    %20 = vector.load %arg6[%c0_10, %c0_11] : memref<8x128xf32, #tpu.memory_space<vmem>>, vector<8x128xf32>
    tpu.vector_store %arg6[%c0_10, %c0_11], %19 {strides = array<i32>} : memref<8x128xf32, #tpu.memory_space<vmem>>, vector<8x128xf32>,
    %c0_12 = arith.constant 0 : index
    %c0_13 = arith.constant 0 : index
    %21 = vector.load %arg5[%c0_12, %c0_13] : memref<8x128xf32, #tpu.memory_space<vmem>>, vector<8x128xf32>
    %22 = arith.addf %21, %17 : vector<8x128xf32>
    %c0_14 = arith.constant 0 : index
    %c0_15 = arith.constant 0 : index
    %23 = vector.load %arg5[%c0_14, %c0_15] : memref<8x128xf32, #tpu.memory_space<vmem>>, vector<8x128xf32>
    tpu.vector_store %arg5[%c0_14, %c0_15], %22 {strides = array<i32>} : memref<8x128xf32, #tpu.memory_space<vmem>>, vector<8x128xf32>,
    %c0_i32_16 = arith.constant 0 : i32
    %24 = arith.cmpi eq, %arg1, %c0_i32_16 : i32
    %25 = arith.extui %24 : i1 to i32
    %c0_i32_17 = arith.constant 0 : i32
    %26 = arith.cmpi ne, %25, %c0_i32_17 : i32
    scf.if %26 {
      %c0_18 = arith.constant 0 : index
      %c0_19 = arith.constant 0 : index
      %27 = vector.load %arg5[%c0_18, %c0_19] : memref<8x128xf32, #tpu.memory_space<vmem>>, vector<8x128xf32>
      %28 = vector.shape_cast %27 : vector<8x128xf32> to vector<1x8x128xf32>
      %cst_20 = arith.constant dense<0.000000e+00> : vector<1xf32>
      %29 = vector.multi_reduction <add>, %28, %cst_20 [1, 2] : vector<1x8x128xf32> to vector<1xf32>
      %30 = vector.shape_cast %29 : vector<1xf32> to vector<1x1x1xf32>
      %31 = vector.extract %30[0, 0, 0] : f32 from vector<1x1x1xf32>
      %c0_21 = arith.constant 0 : index
      %c0_22 = arith.constant 0 : index
      %32 = vector.load %arg6[%c0_21, %c0_22] : memref<8x128xf32, #tpu.memory_space<vmem>>, vector<8x128xf32>
      %33 = vector.shape_cast %32 : vector<8x128xf32> to vector<1x8x128xf32>
      %cst_23 = arith.constant dense<0.000000e+00> : vector<1xf32>
      %34 = vector.multi_reduction <add>, %33, %cst_23 [1, 2] : vector<1x8x128xf32> to vector<1xf32>
      %35 = vector.shape_cast %34 : vector<1xf32> to vector<1x1x1xf32>
      %36 = vector.extract %35[0, 0, 0] : f32 from vector<1x1x1xf32>
      %cst_24 = arith.constant 2.000000e+00 : f32
      %37 = arith.mulf %cst_24, %31 : f32
      %cst_25 = arith.constant 1.000000e+00 : f32
      %38 = arith.addf %37, %cst_25 : f32
      %cst_26 = arith.constant 2.560000e+02 : f32
      %39 = arith.addf %36, %cst_26 : f32
      %cst_27 = arith.constant 1.000000e+00 : f32
      %40 = arith.addf %39, %cst_27 : f32
      %41 = arith.divf %38, %40 : f32
      %42 = vector.broadcast %41 : f32 to vector<1x8x128xf32>
      %c0_28 = arith.constant 0 : index
      %c0_29 = arith.constant 0 : index
      %c0_30 = arith.constant 0 : index
      %43 = vector.load %arg4[%c0_28, %c0_29, %c0_30] : memref<1x8x128xf32, #tpu.memory_space<vmem>>, vector<1x8x128xf32>
      tpu.vector_store %arg4[%c0_28, %c0_29, %c0_30], %42 {strides = array<i32>} : memref<1x8x128xf32, #tpu.memory_space<vmem>>, vector<1x8x128xf32>,
    } else {
    }
    return
  }
  func.func @transform_0(%arg0: i32, %arg1: i32) -> (i32, i32, i32) {
    %c0_i32 = arith.constant 0 : i32
    %c0_i32_0 = arith.constant 0 : i32
    return %arg0, %arg1, %c0_i32 : i32, i32, i32
  }
  func.func @transform_1(%arg0: i32, %arg1: i32) -> (i32, i32, i32) {
    %c0_i32 = arith.constant 0 : i32
    %c0_i32_0 = arith.constant 0 : i32
    return %arg0, %arg1, %c0_i32 : i32, i32, i32
  }
  func.func @transform_2(%arg0: i32, %arg1: i32) -> (i32, i32, i32) {
    %c0_i32 = arith.constant 0 : i32
    %c0_i32_0 = arith.constant 0 : i32
    %c0_i32_1 = arith.constant 0 : i32
    return %arg0, %c0_i32, %c0_i32_0 : i32, i32, i32
  }
}

</mosaic_0001>

<bundles_post_ra>
// kernel: tpu_custom_call.1
= control target key start
LH: loop header
LB: loop body
LE: loop exit
PB: predicated region body
PF: predicated region fallthrough
CT: control target
= control target key end

     0   :  { %7 = vsyncpa [#allocation5], 0  ;;  %s951_s0 = inlined_call_operand.hbm [shape: f32[2,32,128], index: 0, kind: input, shape index: {}]   ;;  %s952_s1 = inlined_call_operand.hbm [shape: s8[2,32,128], index: 1, kind: input, shape index: {}]   ;;  %s953_s2 = inlined_call_operand.hbm [shape: f32[2,8,128], index: 2, kind: output, shape index: {}]  }
   0x1   :  { %9 = vsyncpa [#allocation5 + $0x1], 0 }
   0x2   :  { %10 = vsyncpa [#allocation8], 0 }
   0x3   :  { %12 = vsyncpa [#allocation8 + $0x1], 0 }
   0x4   :  { %13 = vsyncpa [#allocation6], 0 }
   0x5   :  { %15 = vsyncpa [#allocation6 + $0x1], 0  ;;  %s781_s9 = smov 0   ;;  %s783_s10 = smov 0  }
   0x6   :  { %s785_s11 = smov 0   ;;  %s787_s12 = smov 0  }
   0x7   :  { %s789_s13 = smov 0   ;;  %s791_s14 = smov 0  }
   0x8 LB: > { %s501_s15 = sadd.s32 4294967295, %s762_s14   ;;  %s502_s16 = sadd.s32 4294967294, %s762_s14   ;;  %s762_s14 = sphi %s791_s14, %s21_s14   ;;  %s758_s13 = sphi %s789_s13, %s971_s13   ;;  %s754_s12 = sphi %s787_s12, %s970_s12   ;;  %s750_s11 = sphi %s785_s11, %s969_s11   ;;  %s746_s10 = sphi %s783_s10, %s968_s10   ;;  %s742_s9 = sphi %s781_s9, %s967_s9  }
   0x9   : > { %s33_s17 = sadd.s32 1, %s758_s13  ;;  %s42_s18 = sadd.s32 1, %s750_s11 }
   0xa   : > { %p35_p0 = scmp.ge.s32.totalorder %s33_s17, 2  ;;  %p49_p1 = scmp.ne.s32.totalorder %s750_s11, %s746_s10 }
   0xb   : > { %p50_p2 = scmp.eq.s32.totalorder %s762_s14, 0  ;;  %p55_p3 = scmp.ne.s32.totalorder %s746_s10, %s742_s9 }
   0xc   : > { %s973_s17 = smov (%p35_p0, %s33_s17), 0  ;;  %p56_p5 = scmp.eq.s32.totalorder %s501_s15, 0 }
   0xd   : > { %p822_p4 = por %p50_p2, %p49_p1  ;;  %s37_s20 = ssub.s32 %s758_s13, %s973_s17 }
   0xe   : > { %p107_p6 = scmp.eq.s32.totalorder %s501_s15, 1  ;;  %p40_p7 = scmp.eq.s32.totalorder %s37_s20, 0 }
   0xf   : > { %p828_p8 = por %p56_p5, %p55_p3  ;;  %p113_p10 = scmp.eq.s32.totalorder %s502_s16, 1 }
  0x10   : > { %p832_p9 = por %p107_p6, %p49_p1  ;;  %p504_p12 = scmp.ge.s32.totalorder %s762_s14, 2 }
  0x11   : > { %s837_s23 = scalar_select %p40_p7, %s750_s11, %s42_s18  }
  0x12   : > { %p839_p11 = por %p113_p10, %p55_p3  ;;  %p546_p13 = scmp.lt.s32.totalorder %s762_s14, 2 }
  0x13   : > { %s133_s25 = sand.u32 1, %s750_s11   ;;  %s522_s27 = sshll.u32 %s758_s13, 5 }
  0x14   : > { %s505_s26 = sshll.u32 %s133_s25, 5  ;;  %s144_s30 = scalar_lea.hbm %s951_s0, %s522_s27 }
  0x15   : > { %s137_s3 = scalar_lea.vmem [#allocation4], %s505_s26  ;;  %s145_s5 = sshll.u32 %s144_s30, 4  ;;  %s146_s5 = int_to_ptr.hbm [resolvable:$true] %s145_s5 }
  0x16   : > { %s147_s4 = sshll.u32 %s137_s3, 4  ;;  %p852_p0 = pnand %p546_p13, %p822_p4  ;;  %s148_s4 = int_to_ptr.vmem [resolvable:$true] %s147_s4 }
  0x17   : > { %p510_p1 = scmp.ge.s32.totalorder %s762_s14, 1  ;;  %s134_s7 = scalar_lea.sflag [#allocation5], %s133_s25 }
  0x18   : > { %s764_s8 = smov 128   ;;  %s765_s15 = smov 8  }
  0x19   : > { %538 = dma.hbm_to_vmem [thread:$0]  (!%p852_p0), %s146_s5, 512, %s148_s4, %s134_s7, %s764_s8, %s764_s8, %s765_s15  }
  0x1a   : > { %p175_p2 = scmp.lt.s32.totalorder %s762_s14, 3  ;;  %s508_s16 = sshll.u32 %s133_s25, 3 }
  0x1b   : > { %s509_s18 = sshll.u32 %s758_s13, 3  ;;  %s161_s27 = scalar_lea.vmem [#allocation7], %s508_s16 }
  0x1c   : > { %p176_p3 = pnand %p510_p1, %p175_p2  ;;  %s166_s19 = scalar_lea.hbm %s952_s1, %s509_s18 }
  0x1d   : > { %s170_s28 = sshll.u32 %s161_s27, 4  ;;  %s168_s29 = sshll.u32 %s166_s19, 4  ;;  %s171_s28 = int_to_ptr.vmem [resolvable:$true] %s170_s28  ;;  %s169_s29 = int_to_ptr.hbm [resolvable:$true] %s168_s29 }
  0x1e   : > { %s158_s30 = scalar_lea.sflag [#allocation8], %s133_s25  ;;  %179 = sbr.rel (%p176_p3) target bundleno = 341 (0x155), region = 28 }
  0x1f   : > { %541 = dma.hbm_to_vmem [thread:$0]  (!%p852_p0), %s169_s29, 128, %s171_s28, %s158_s30  }
  0x20   : > { %s867_s3 = sand.u32 (!%p176_p3), 1, %s746_s10  }
  0x21   : > { %s511_s4 = sshll.u32 (!%p176_p3), %s867_s3, 5  ;;  %s182_s5 = scalar_lea.sflag (!%p176_p3), [#allocation5], %s867_s3 }
  0x22   : > { %s185_s7 = scalar_lea.vmem (!%p176_p3), [#allocation4], %s511_s4 }
  0x23   : > { %729 = dma.done.wait (%p828_p8), %s182_s5, 512  }
  0x24   : > { %731 = vsyncadd (%p828_p8), %s182_s5, 4294966784  ;;  %s512_s25 = sshll.u32 %s867_s3, 3  ;;  %s192_s6 = scalar_lea.sflag [#allocation8], %s867_s3 }
  0x25   : > { %s195_s8 = scalar_lea.vmem [#allocation7], %s512_s25 }
  0x26   : > { %733 = dma.done.wait (%p828_p8), %s192_s6, 128  }
  0x27   : > { %735 = vsyncadd (%p828_p8), %s192_s6, 4294967168  ;;  %v229_v0 = vld [vmem:[%s185_s7] sm:$0xff]  ;;  %v230_v1 = vld [vmem:[%s185_s7 + $0x8] sm:$0xff]  ;;  %s519_s20 = sshll.u32 %s754_s12, 3  ;;  %s221_s29 = scalar_lea.vmem [#allocation9], %s512_s25 }
  0x28   : > { %v231_v2 = vld [vmem:[%s185_s7 + $0x10] sm:$0xff]  ;;  %v232_v3 = vld [vmem:[%s185_s7 + $0x18] sm:$0xff]  ;;  %v514_v4 = vmul.f32 -1.442695, %v229_v0  ;;  %v515_v5 = vmul.f32 -1.442695, %v230_v1  ;;  %s391_s28 = scalar_lea.hbm %s953_s2, %s519_s20 }
  0x29   : > { %v516_v6 = vmul.f32 -1.442695, %v231_v2  ;;  %v517_v7 = vmul.f32 -1.442695, %v232_v3  ;;  %v309_v13 = vld [vmem:[%s195_s8] sm:$0xff]  ;;  %s393_s30 = sshll.u32 %s221_s29, 4  ;;  %s394_s30 = int_to_ptr.vmem [resolvable:$true] %s393_s30 }
  0x2a   : > { %598 = vpow2.f32 %v514_v4  ;;  %v310_v17 = vunpack.c.0.s8 %v309_v13  ;;  %v311_v18 = vunpack.c.1.s8 %v309_v13  ;;  %v312_v19 = vunpack.c.2.s8 %v309_v13  ;;  %s395_s5 = sshll.u32 %s391_s28, 4  ;;  %s381_s8 = scalar_lea.sflag [#allocation6], %s867_s3  ;;  %s396_s5 = int_to_ptr.hbm [resolvable:$true] %s395_s5 }
  0x2b   : > { %600 = vpow2.f32 %v515_v5  ;;  %v313_v22 = vunpack.c.3.s8 %v309_v13  ;;  %s696_s25 = scalar_lea.hbm %s953_s2, 16 }
  0x2c   : > { %602 = vpow2.f32 %v516_v6  ;;  %v314_v25 = vcvt.s32.f32 %v310_v17  ;;  %v315_v26 = vcvt.s32.f32 %v311_v18  ;;  %v316_v27 = vcvt.s32.f32 %v312_v19 }
  0x2d   : > { %604 = vpow2.f32 %v517_v7  ;;  %v317_v56 = vcvt.s32.f32 %v313_v22 }
  0x30   : > { %v599_v8 = vpop.eup %598 }
  0x31   : > { %v601_v9 = vpop.eup %600  ;;  %v245_v10 = vadd.f32 1.0, %v599_v8 }
  0x32   : > { %v603_v11 = vpop.eup %602  ;;  %v246_v12 = vadd.f32 1.0, %v601_v9 }
  0x33   : > { %v605_v14 = vpop.eup %604  ;;  %v247_v15 = vadd.f32 1.0, %v603_v11  ;;  %606 = vrcp.f32 %v245_v10  ;;  %v258_v20 = vand.u32 2147483647, %v245_v10  ;;  %v260_v21 = vand.u32 2147483648, %v245_v10 }
  0x34   : > { %v248_v16 = vadd.f32 1.0, %v605_v14  ;;  %608 = vrcp.f32 %v246_v12  ;;  %v275_v24 = vand.u32 2147483648, %v246_v12  ;;  %vm254_vm0 = vweird.f32 %v245_v10 }
  0x35   : > { %610 = vrcp.f32 %v247_v15  ;;  %vm883_vm1 = vcmp.eq.f32.partialorder %v258_v20, 8.507059e+37  ;;  %vm269_vm2 = vweird.f32 %v246_v12  ;;  %v261_v32 = vor.u32 1.1754944e-38, %v260_v21 }
  0x36   : > { %612 = vrcp.f32 %v248_v16  ;;  %v273_v34 = vand.u32 2147483647, %v246_v12  ;;  %vm284_vm3 = vweird.f32 %v247_v15  ;;  %v288_v37 = vand.u32 2147483647, %v247_v15 }
  0x37   : > { %v276_v40 = vor.u32 1.1754944e-38, %v275_v24  ;;  %v290_v41 = vand.u32 2147483648, %v247_v15  ;;  %vm299_vm8 = vweird.f32 %v248_v16  ;;  %v303_v47 = vand.u32 2147483647, %v248_v16 }
  0x38   : > { %v305_v48 = vand.u32 2147483648, %v248_v16  ;;  %vm274_vm11 = vcmp.eq.f32.partialorder %v273_v34, 8.507059e+37  ;;  %vm289_vm13 = vcmp.eq.f32.partialorder %v288_v37, 8.507059e+37 }
  0x39   : > { %v607_v23 = vpop.eup %606  ;;  %v291_v55 = vor.u32 1.1754944e-38, %v290_v41  ;;  %vm304_vm15 = vcmp.eq.f32.partialorder %v303_v47, 8.507059e+37 }
  0x3a   : > { %v609_v28 = vpop.eup %608  ;;  %v250_v29 = vmul.f32 %v607_v23, %v245_v10  ;;  %vm255_vm4 = vweird.f32 %v607_v23  ;;  %v306_v62 = vor.u32 1.1754944e-38, %v305_v48 }
  0x3b   : > { %v611_v31 = vpop.eup %610  ;;  %v265_v33 = vmul.f32 %v609_v28, %v246_v12  ;;  %vm270_vm5 = vweird.f32 %v609_v28  ;;  %vm888_vm7 = vmor %vm254_vm0, %vm255_vm4 }
  0x3c   : > { %v251_v35 = vsub.f32 1.0, %v250_v29  ;;  %v280_v36 = vmul.f32 %v611_v31, %v247_v15  ;;  %v613_v38 = vpop.eup %612  ;;  %vm285_vm6 = vweird.f32 %v611_v31  ;;  %vm893_vm9 = vmor %vm269_vm2, %vm270_vm5 }
  0x3d   : > { %v266_v39 = vsub.f32 1.0, %v265_v33  ;;  %v295_v44 = vmul.f32 %v613_v38, %v248_v16  ;;  %vm300_vm10 = vweird.f32 %v613_v38  ;;  %vm898_vm12 = vmor %vm284_vm3, %vm285_vm6 }
  0x3e   : > { %v252_v42 = vmul.f32 %v607_v23, %v251_v35  ;;  %v281_v43 = vsub.f32 1.0, %v280_v36  ;;  %vm301_vm14 = vmor %vm299_vm8, %vm300_vm10 }
  0x3f   : > { %v267_v46 = vmul.f32 %v609_v28, %v266_v39  ;;  %v296_v52 = vsub.f32 1.0, %v295_v44 }
  0x40   : > { %v253_v49 = vadd.f32 %v607_v23, %v252_v42  ;;  %v282_v51 = vmul.f32 %v611_v31, %v281_v43 }
  0x41   : > { %v268_v53 = vadd.f32 %v609_v28, %v267_v46  ;;  %v297_v59 = vmul.f32 %v613_v38, %v296_v52 }
  0x42   : > { %v257_v57 = vsel %vm888_vm7, %v607_v23, %v253_v49  ;;  %v283_v58 = vadd.f32 %v611_v31, %v282_v51 }
  0x43   : > { %v262_v60 = vsel %vm883_vm1, %v261_v32, %v257_v57  ;;  %v272_v61 = vsel %vm893_vm9, %v609_v28, %v268_v53  ;;  %v298_v1 = vadd.f32 %v613_v38, %v297_v59 }
  0x44   : > { %v277_v63 = vsel %vm274_vm11, %v276_v40, %v272_v61  ;;  %v287_v0 = vsel %vm898_vm12, %v611_v31, %v283_v58  ;;  %v321_v2 = vmul.f32 %v314_v25, %v262_v60 }
  0x45   : > { %v292_v3 = vsel %vm289_vm13, %v291_v55, %v287_v0  ;;  %v322_v4 = vmul.f32 %v315_v26, %v277_v63  ;;  %v302_v5 = vsel %vm301_vm14, %v613_v38, %v298_v1  ;;  %v318_v11 = vadd.f32 %v277_v63, %v262_v60 }
  0x46   : > { %v323_v6 = vmul.f32 %v316_v27, %v292_v3  ;;  %v307_v7 = vsel %vm304_vm15, %v306_v62, %v302_v5 }
  0x47   : > { %v325_v8 = vadd.f32 %v322_v4, %v321_v2  ;;  %v324_v9 = vmul.f32 %v317_v56, %v307_v7  ;;  %v319_v13 = vadd.f32 %v318_v11, %v292_v3 }
  0x49   : > { %v326_v10 = vadd.f32 %v325_v8, %v323_v6  ;;  %v320_v14 = vadd.f32 %v319_v13, %v307_v7 }
  0x4b   : > { %v327_v12 = vadd.f32 %v326_v10, %v324_v9 }
  0x4d   : > { %338 = vadd.xlane.f32.xlu0 %v327_v12 }
  0x55   : > { %348 = vadd.xlane.f32.xlu0 %v320_v14 }
  0xc0   : > { %v339_v15 = vpop.xlane.xlu0 %338 }
  0xc1   : > { %v340_v16 = vrot.slane %v339_v15, 4 }
  0xc3   : > { %v341_v17 = vadd.f32 %v340_v16, %v339_v15 }
  0xc5   : > { %v342_v18 = vrot.slane %v341_v17, 2 }
  0xc7   : > { %v343_v19 = vadd.f32 %v342_v18, %v341_v17 }
  0xc8   : > { %v349_v20 = vpop.xlane.xlu0 %348 }
  0xc9   : > { %v350_v21 = vrot.slane %v349_v20, 4  ;;  %v344_v22 = vrot.slane %v343_v19, 1 }
  0xcb   : > { %v351_v23 = vadd.f32 %v350_v21, %v349_v20  ;;  %v345_v24 = vadd.f32 %v344_v22, %v343_v19 }
  0xcd   : > { %v352_v25 = vrot.slane %v351_v23, 2  ;;  %523 = vpush %v345_v24 }
  0xcf   : > { %v353_v26 = vadd.f32 %v352_v25, %v351_v23 }
  0xd1   : > { %v354_v27 = vrot.slane %v353_v26, 1 }
  0xd3   : > { %v355_v28 = vadd.f32 %v354_v27, %v353_v26 }
  0xd5   : > { %525 = vpush %v355_v28 }
  0xfe   : > { %s524_s21 = spop %523 }
  0xff   : > { %s357_s26 = smul.f32 2.0, %s524_s21 }
 0x101   : > { %s358_s4 = sadd.f32 1.0, %s357_s26 }
 0x106   : > { %s526_s15 = spop %525 }
 0x107   : > { %s359_s16 = sadd.f32 256.0, %s526_s15  ;;  %s690_s15 = sshra.s32 %s396_s5, 4  ;;  %s691_s15 = int_to_ptr.hbm [resolvable:$true] %s690_s15 }
 0x108   : > { %s692_s12 = scalar_lea.hbm %s691_s15, 8  ;;  %p697_p7 = scmp.lt.s32.totalorder %s691_s15, %s953_s2 }
 0x109   : > { %s360_s18 = sadd.f32 1.0, %s359_s16  ;;  %p693_p4 = scmp.ne.s32.totalorder %s691_s15, %s692_s12 }
 0x10a   : > { %p698_p8 = scmp.lt.s32.totalorder %s696_s25, %s692_s12 }
 0x10b   : > { %v361_v29 = vstv %s360_s18  ;;  %p694_p5 = pnand %p693_p4, %p832_p9 }
 0x10c   : > { %614 = vrcp.f32 %v361_v29  ;;  %v373_v33 = vand.u32 2147483648, %v361_v29  ;;  %v371_v35 = vand.u32 2147483647, %v361_v29  ;;  %vm367_vm1 = vweird.f32 %v361_v29  ;;  %p699_p10 = por %p698_p8, %p697_p7 }
 0x10d   : > { %p695_p6 = pneg %p694_p5 }
 0x10e   : > { %v374_v37 = vor.u32 1.1754944e-38, %v373_v33  ;;  %vm372_vm3 = vcmp.eq.f32.partialorder %v371_v35, 8.507059e+37 }
 0x10f   : > { %p700_p13 = pnand %p699_p10, %p695_p6 }
 0x112   : > { %v615_v30 = vpop.eup %614 }
 0x113   : > { %v363_v31 = vmul.f32 %v615_v30, %v361_v29  ;;  %vm368_vm0 = vweird.f32 %v615_v30 }
 0x114   : > { %vm369_vm2 = vmor %vm367_vm1, %vm368_vm0 }
 0x115   : > { %v364_v32 = vsub.f32 1.0, %v363_v31 }
 0x117   : > { %v365_v34 = vmul.f32 %v615_v30, %v364_v32 }
 0x119   : > { %v366_v36 = vadd.f32 %v615_v30, %v365_v34 }
 0x11b   : > { %v370_v38 = vsel %vm369_vm2, %v615_v30, %v366_v36 }
 0x11c   : > { %v375_v39 = vsel %vm372_vm3, %v374_v37, %v370_v38 }
 0x11d   : > { %527 = vpush %v375_v39 }
 0x14e   : > { %s528_s7 = spop %527 }
 0x14f   : > { %s377_s6 = smul.f32 %s528_s7, %s358_s4 }
 0x151   : > { %v378_v40 = vstv %s377_s6 }
 0x152   : > { %379 = vst [vmem:[%s221_s29] sm:$0xff] %v378_v40 }
 0x153   : > { %703 = shalt.err (!%p700_p13)
}
 0x154   : > { %533 = dma.vmem_to_hbm [thread:$0]  (%p832_p9), %s394_s30, 128, %s396_s5, %s381_s8  }
 0x155 PF: > { %s407_s3 = sand.u32 1, %s742_s9   ;;  %p543_p0 = pnand %p504_p12, %p839_p11 }
 0x156   : > { %s408_s26 = scalar_lea.sflag [#allocation6], %s407_s3 }
 0x157   : > { %p544_p1 = pneg %p543_p0 }
 0x159   : > { %737 = dma.done.wait (%p544_p1), %s408_s26, 128  }
 0x15a   : > { %739 = vsyncadd (%p544_p1), %s408_s26, 4294967168  ;;  %s21_s14 = sadd.s32 1, %s762_s14   ;;  %s967_s9 = smov %s746_s10 }
 0x15b   : > { %p18_p2 = scmp.ge.s32.totalorder %s21_s14, 4   ;;  %s968_s10 = smov %s750_s11 }
 0x15c   : > { %s969_s11 = smov %s837_s23  ;;  %s970_s12 = smov %s758_s13 }
 0x15d   : > { %s971_s13 = smov %s973_s17  ;;  %20 = sbr.rel (!%p18_p2) target bundleno = 8 (0x8), region = 94 }
 0x162   :  { %414 = vsyncpa [#allocation5], 1 }
 0x163   :  { %416 = vsyncpa [#allocation5 + $0x1], 1 }
 0x164   :  { %417 = vsyncpa [#allocation8], 1 }
 0x165   :  { %419 = vsyncpa [#allocation8 + $0x1], 1 }
 0x166   :  { %420 = vsyncpa [#allocation6], 1 }
 0x167   :  { %422 = vsyncpa [#allocation6 + $0x1], 1 }

</bundles_post_ra>
